<compile_context>
chip_gen: v7x
topology: tpu7x:2x2x1
jax: 0.10.0
libtpu: 0.0.40
codegen_flags: <defaults>
</compile_context>

<pallas_src>
import functools

import jax
import jax.numpy as jnp
from jax.experimental import pallas as pl
from jax.experimental.pallas import tpu as pltpu


def _int_pow(base, g):
    """base ** g for small non-negative integer g, via repeated multiplies."""
    if g == 0:
        return jnp.ones_like(base)
    result = base
    for _ in range(g - 1):
        result = result * base
    return result


def _bce_focal_kernel(x_ref, t_ref, o_ref, *, gamma, alpha):
    x = x_ref[...]                 # [TILE_ROWS, COLS]  float32
    t = t_ref[...]                 # [TILE_ROWS, COLS]  float32

    one_minus_x = 1.0 - x
    one_minus_t = 1.0 - t

    # Specialize the pow: integer gamma -> VPU multiplies (no EUP exp/log).
    g_float = float(gamma)
    if g_float == float(int(g_float)) and int(g_float) >= 0:
        g = int(g_float)
        pow_1mx = _int_pow(one_minus_x, g)
        pow_x = _int_pow(x, g)
    else:
        # Truly non-integer gamma: fall back to float-exponent pow.
        pow_1mx = one_minus_x ** gamma
        pow_x = x ** gamma

    pos = (alpha * pow_1mx) * (t * jnp.log(x + 1e-14))
    neg = pow_x * (one_minus_t * jnp.log(one_minus_x + 1e-14))
    loss = pos + neg

    # Per-row (i.e. per (b, c)) sum over the flattened H*W axis, negated.
    o_ref[...] = (-jnp.sum(loss, axis=-1, keepdims=True)).astype(o_ref.dtype)


def bce_focal_loss(inputs, targets, gamma=2.0, alpha=0.6):
    assert inputs.shape == targets.shape
    assert inputs.ndim >= 2
    *lead, H, W = inputs.shape
    rows = 1
    for d in lead:
        rows *= d
    cols = H * W

    x = inputs.reshape(rows, cols).astype(jnp.float32)
    t = targets.reshape(rows, cols).astype(jnp.float32)

    # Lane-dense feature axis: pad to a multiple of 128.
    # Padding with x=0, t=0 contributes exactly 0 to every row sum.
    cols_p = ((cols + 127) // 128) * 128
    if cols_p != cols:
        x = jnp.pad(x, ((0, 0), (0, cols_p - cols)))
        t = jnp.pad(t, ((0, 0), (0, cols_p - cols)))

    # Row tile: multiple of 8, <= 512 rows, and each input tile <= ~4 MiB so
    # 2 inputs x 2 pipeline buffers stay well inside v7x's 64 MiB VMEM.
    max_tile_rows = (4 * 1024 * 1024) // (4 * cols_p)
    max_tile_rows = max(8, min(512, (max_tile_rows // 8) * 8))
    tile_rows = min(max_tile_rows, ((rows + 7) // 8) * 8)
    rows_p = ((rows + tile_rows - 1) // tile_rows) * tile_rows
    if rows_p != rows:
        x = jnp.pad(x, ((0, rows_p - rows), (0, 0)))
        t = jnp.pad(t, ((0, rows_p - rows), (0, 0)))

    grid = (rows_p // tile_rows,)
    kernel = functools.partial(_bce_focal_kernel, gamma=gamma, alpha=alpha)

    out = pl.pallas_call(
        kernel,
        out_shape=jax.ShapeDtypeStruct((rows_p, 1), jnp.float32),
        grid_spec=pltpu.PrefetchScalarGridSpec(
            num_scalar_prefetch=0,
            grid=grid,
            in_specs=[
                pl.BlockSpec((tile_rows, cols_p), lambda i: (i, 0)),
                pl.BlockSpec((tile_rows, cols_p), lambda i: (i, 0)),
            ],
            out_specs=pl.BlockSpec((tile_rows, 1), lambda i: (i, 0)),
        ),
        compiler_params=pltpu.CompilerParams(
            dimension_semantics=("parallel",),
            vmem_limit_bytes=64 * 1024 * 1024,
        ),
    )(x, t)

    return out[:rows, 0].reshape(tuple(lead))


def _reference(inputs, targets, gamma=2.0, alpha=0.6):
    loss = (alpha * (1.0 - inputs) ** gamma * targets * jnp.log(inputs + 1e-14)
            + inputs ** gamma * (1.0 - targets) * jnp.log(1.0 - inputs + 1e-14))
    return -jnp.sum(jnp.sum(loss, axis=-1), axis=-1)


if __name__ == "__main__":
    key = jax.random.PRNGKey(0)
    k_x, k_t = jax.random.split(key)

    B, C, H, W = 2, 4, 16, 16
    # inputs are probabilities in (0, 1); targets are binary labels.
    inputs = jax.random.uniform(k_x, (B, C, H, W), dtype=jnp.float32,
                                minval=1e-3, maxval=1.0 - 1e-3)
    targets = jax.random.bernoulli(k_t, 0.5, (B, C, H, W)).astype(jnp.float32)

    out = bce_focal_loss(inputs, targets, gamma=2.0, alpha=0.6)
    out = jax.block_until_ready(out)

    ref = _reference(inputs, targets, gamma=2.0, alpha=0.6)
    assert out.shape == (B, C)
    assert jnp.allclose(out, ref, rtol=1e-5, atol=1e-4)

    print("KERNEL_OK")
</pallas_src>

<mosaic_0001>
module attributes {stable_mosaic.version = 11 : i64} {
  func.func @_bce_focal_kernel(%arg0: i32, %arg1: memref<8x256xf32, #tpu.memory_space<vmem>>, %arg2: memref<8x256xf32, #tpu.memory_space<vmem>>, %arg3: memref<8x1xf32, #tpu.memory_space<vmem>>) attributes {dimension_semantics = [#tpu.dimension_semantics<parallel>], iteration_bounds = array<i64: 1>, scalar_prefetch = 0 : i64, scratch_operands = 0 : i64, tpu.core_type = #tpu.core_type<tc>, window_params = [{transform_indices = @transform_0, window_bounds = array<i64: 8, 256>}, {transform_indices = @transform_1, window_bounds = array<i64: 8, 256>}, {transform_indices = @transform_2, window_bounds = array<i64: 8, 1>}]} {
    %c0 = arith.constant 0 : index
    %c0_0 = arith.constant 0 : index
    %0 = vector.load %arg1[%c0, %c0_0] : memref<8x256xf32, #tpu.memory_space<vmem>>, vector<8x256xf32>
    %c0_1 = arith.constant 0 : index
    %c0_2 = arith.constant 0 : index
    %1 = vector.load %arg2[%c0_1, %c0_2] : memref<8x256xf32, #tpu.memory_space<vmem>>, vector<8x256xf32>
    %cst = arith.constant 1.000000e+00 : f32
    %2 = vector.broadcast %cst : f32 to vector<8x256xf32>
    %3 = arith.subf %2, %0 : vector<8x256xf32>
    %cst_3 = arith.constant 1.000000e+00 : f32
    %4 = vector.broadcast %cst_3 : f32 to vector<8x256xf32>
    %5 = arith.subf %4, %1 : vector<8x256xf32>
    %6 = arith.mulf %3, %3 : vector<8x256xf32>
    %7 = arith.mulf %0, %0 : vector<8x256xf32>
    %cst_4 = arith.constant 6.000000e-01 : f32
    %8 = vector.broadcast %cst_4 : f32 to vector<8x256xf32>
    %9 = arith.mulf %8, %6 : vector<8x256xf32>
    %cst_5 = arith.constant 9.99999982E-15 : f32
    %10 = vector.broadcast %cst_5 : f32 to vector<8x256xf32>
    %11 = arith.addf %0, %10 : vector<8x256xf32>
    %12 = math.log %11 : vector<8x256xf32>
    %13 = arith.mulf %1, %12 : vector<8x256xf32>
    %14 = arith.mulf %9, %13 : vector<8x256xf32>
    %cst_6 = arith.constant 9.99999982E-15 : f32
    %15 = vector.broadcast %cst_6 : f32 to vector<8x256xf32>
    %16 = arith.addf %3, %15 : vector<8x256xf32>
    %17 = math.log %16 : vector<8x256xf32>
    %18 = arith.mulf %5, %17 : vector<8x256xf32>
    %19 = arith.mulf %7, %18 : vector<8x256xf32>
    %20 = arith.addf %14, %19 : vector<8x256xf32>
    %cst_7 = arith.constant dense<0.000000e+00> : vector<8xf32>
    %21 = vector.multi_reduction <add>, %20, %cst_7 [1] : vector<8x256xf32> to vector<8xf32>
    %22 = vector.shape_cast %21 : vector<8xf32> to vector<8x1xf32>
    %cst_8 = arith.constant 0.000000e+00 : f32
    %23 = vector.broadcast %cst_8 : f32 to vector<8x1xf32>
    %24 = arith.subf %23, %22 : vector<8x1xf32>
    %c0_9 = arith.constant 0 : index
    %c0_10 = arith.constant 0 : index
    %25 = vector.load %arg3[%c0_9, %c0_10] : memref<8x1xf32, #tpu.memory_space<vmem>>, vector<8x1xf32>
    tpu.vector_store %arg3[%c0_9, %c0_10], %24 {strides = array<i32>} : memref<8x1xf32, #tpu.memory_space<vmem>>, vector<8x1xf32>,
    return
  }
  func.func @transform_0(%arg0: i32) -> (i32, i32) {
    %c0_i32 = arith.constant 0 : i32
    %c0_i32_0 = arith.constant 0 : i32
    return %arg0, %c0_i32 : i32, i32
  }
  func.func @transform_1(%arg0: i32) -> (i32, i32) {
    %c0_i32 = arith.constant 0 : i32
    %c0_i32_0 = arith.constant 0 : i32
    return %arg0, %c0_i32 : i32, i32
  }
  func.func @transform_2(%arg0: i32) -> (i32, i32) {
    %c0_i32 = arith.constant 0 : i32
    %c0_i32_0 = arith.constant 0 : i32
    return %arg0, %c0_i32 : i32, i32
  }
}

</mosaic_0001>

<bundles_post_ra>
// kernel: tpu_custom_call.1
= control target key start
LH: loop header
LB: loop body
LE: loop exit
PB: predicated region body
PF: predicated region fallthrough
CT: control target
= control target key end

     0   :  { %7 = vsyncpa [#allocation3], 0  ;;  %s231_s0 = inlined_call_operand.hbm [shape: f32[8,256], index: 0, kind: input, shape index: {}]   ;;  %s232_s1 = inlined_call_operand.hbm [shape: f32[8,256], index: 1, kind: input, shape index: {}]   ;;  %s233_s2 = inlined_call_operand.hbm [shape: f32[8,1], index: 2, kind: output, shape index: {}]  }
   0x1   :  { %8 = vsyncpa [#allocation6], 0 }
   0x2   :  { %9 = vsyncpa [#allocation4], 0  ;;  %s177_s9 = smov [#allocation2]   ;;  %s178_s11 = smov [#allocation5]  }
   0x3   :  { %s16_s10 = sshll.u32 %s177_s9, 4  ;;  %s26_s12 = sshll.u32 %s178_s11, 4  ;;  %s17_s10 = int_to_ptr.vmem [resolvable:$true] %s16_s10  ;;  %s27_s12 = int_to_ptr.vmem [resolvable:$true] %s26_s12 }
   0x4   :  { %s105_s15 = scalar_lea.hbm %s231_s0, 256 }
   0x5   :  { %p106_p0 = scmp.ne.s32.totalorder %s231_s0, %s105_s15  ;;  %p109_p1 = scmp.lt.u32.totalorder %s105_s15, %s231_s0 }
   0x7   :  { %p111_p2 = pnand %p109_p1, %p106_p0 }
   0x9   :  { %114 = shalt.err (!%p111_p2)
}
   0xa   :  { %s115_s20 = scalar_lea.vmem %s17_s10, 256  ;;  %p120_p4 = scmp.lt.s32.totalorder %s17_s10, %s17_s10 }
   0xb   :  { %p116_p3 = scmp.ne.s32.totalorder %s17_s10, %s115_s20  ;;  %p121_p5 = scmp.lt.s32.totalorder %s115_s20, %s115_s20 }
   0xd   :  { %p122_p6 = por %p121_p5, %p120_p4 }
   0xf   :  { %p123_p7 = pnand %p122_p6, %p116_p3 }
  0x11   :  { %126 = shalt.err (!%p123_p7)
}
  0x12   :  { %19 = dma.hbm_to_vmem [thread:$0]  %s231_s0, 256, %s17_s10, [#allocation3]  }
  0x13   :  { %s127_s25 = scalar_lea.hbm %s232_s1, 256 }
  0x14   :  { %p128_p8 = scmp.ne.s32.totalorder %s232_s1, %s127_s25  ;;  %p131_p9 = scmp.lt.u32.totalorder %s127_s25, %s232_s1 }
  0x16   :  { %p133_p10 = pnand %p131_p9, %p128_p8 }
  0x18   :  { %136 = shalt.err (!%p133_p10)
}
  0x19   :  { %s137_s30 = scalar_lea.vmem %s27_s12, 256  ;;  %p142_p12 = scmp.lt.s32.totalorder %s27_s12, %s27_s12 }
  0x1a   :  { %p138_p11 = scmp.ne.s32.totalorder %s27_s12, %s137_s30  ;;  %p143_p13 = scmp.lt.s32.totalorder %s137_s30, %s137_s30 }
  0x1c   :  { %p144_p0 = por %p143_p13, %p142_p12 }
  0x1e   :  { %p145_p1 = pnand %p144_p0, %p138_p11 }
  0x20   :  { %148 = shalt.err (!%p145_p1)
}
  0x21   :  { %29 = dma.hbm_to_vmem [thread:$0]  %s232_s1, 256, %s27_s12, [#allocation6]  }
  0x22   :  { %171 = dma.done.wait [#allocation3], 256  }
  0x23   :  { %172 = vsyncadd [#allocation3], 4294967040 }
  0x24   :  { %173 = dma.done.wait [#allocation6], 256  }
  0x25   :  { %174 = vsyncadd [#allocation6], 4294967040  ;;  %v36_v0 = vld [vmem:[#allocation2] sm:$0xff]  ;;  %v37_v1 = vld [vmem:[#allocation2 + $0x8] sm:$0xff]  ;;  %s179_s1 = smov [#allocation7]   ;;  %vm76_vm0 = vcmask 7168  }
  0x26   :  { %v40_v2 = vsub.f32 1.0, %v36_v0  ;;  %v41_v3 = vsub.f32 1.0, %v37_v1  ;;  %v50_v4 = vadd.f32 1e-14, %v36_v0  ;;  %v51_v5 = vadd.f32 1e-14, %v37_v1 }
  0x27   :  { %v38_v9 = vld [vmem:[#allocation5] sm:$0xff]  ;;  %v39_v11 = vld [vmem:[#allocation5 + $0x8] sm:$0xff]  ;;  %v46_v22 = vmul.f32 %v36_v0, %v36_v0  ;;  %v47_v25 = vmul.f32 %v37_v1, %v37_v1  ;;  %s84_s4 = sshll.u32 %s179_s1, 4  ;;  %s85_s4 = int_to_ptr.vmem [resolvable:$true] %s84_s4 }
  0x28   :  { %v60_v6 = vadd.f32 1e-14, %v40_v2  ;;  %v61_v7 = vadd.f32 1e-14, %v41_v3  ;;  %97 = vlog2.f32 %v50_v4  ;;  %v44_v8 = vmul.f32 %v40_v2, %v40_v2  ;;  %s149_s5 = scalar_lea.vmem %s85_s4, 128  ;;  %p154_p3 = scmp.lt.s32.totalorder %s85_s4, %s85_s4 }
  0x29   :  { %99 = vlog2.f32 %v51_v5  ;;  %v45_v10 = vmul.f32 %v41_v3, %v41_v3  ;;  %v42_v14 = vsub.f32 1.0, %v38_v9  ;;  %v43_v18 = vsub.f32 1.0, %v39_v11  ;;  %p150_p2 = scmp.ne.s32.totalorder %s85_s4, %s149_s5  ;;  %p155_p4 = scmp.lt.s32.totalorder %s149_s5, %s149_s5 }
  0x2a   :  { %101 = vlog2.f32 %v60_v6  ;;  %v48_v15 = vmul.f32 0.6, %v44_v8 }
  0x2b   :  { %103 = vlog2.f32 %v61_v7  ;;  %v49_v19 = vmul.f32 0.6, %v45_v10  ;;  %p156_p5 = por %p155_p4, %p154_p3 }
  0x2d   :  { %p157_p6 = pnand %p156_p5, %p150_p2 }
  0x32   :  { %v98_v12 = vpop.eup %97 }
  0x33   :  { %v100_v13 = vpop.eup %99  ;;  %v53_v16 = vmul.f32 0.6931472, %v98_v12 }
  0x34   :  { %v102_v17 = vpop.eup %101  ;;  %v55_v20 = vmul.f32 0.6931472, %v100_v13 }
  0x35   :  { %v104_v21 = vpop.eup %103  ;;  %v56_v23 = vmul.f32 %v53_v16, %v38_v9  ;;  %v63_v24 = vmul.f32 0.6931472, %v102_v17 }
  0x36   :  { %v57_v26 = vmul.f32 %v55_v20, %v39_v11  ;;  %v65_v27 = vmul.f32 0.6931472, %v104_v21 }
  0x37   :  { %v58_v28 = vmul.f32 %v56_v23, %v48_v15  ;;  %v66_v29 = vmul.f32 %v63_v24, %v42_v14 }
  0x38   :  { %v59_v30 = vmul.f32 %v57_v26, %v49_v19  ;;  %v67_v31 = vmul.f32 %v65_v27, %v43_v18 }
  0x39   :  { %v68_v32 = vmul.f32 %v66_v29, %v46_v22 }
  0x3a   :  { %v69_v33 = vmul.f32 %v67_v31, %v47_v25 }
  0x3b   :  { %v70_v34 = vadd.f32 %v68_v32, %v58_v28 }
  0x3c   :  { %v71_v35 = vadd.f32 %v69_v33, %v59_v30 }
  0x3e   :  { %v72_v36 = vadd.f32 %v71_v35, %v70_v34 }
  0x40   :  { %73 = vadd.xlane.f32.xlu0 %v72_v36 }
  0xcd   :  { %v74_v37 = vpop.xlane.xlu0 %73 }
  0xce   :  { %v75_v38 = vsub.f32 0.0, %v74_v37 }
  0xd0   :  { %77 = vst.msk [vmem:[#allocation7] sm:$0xff] %vm76_vm0, %v75_v38 }
  0xd1   :  { %160 = shalt.err (!%p157_p6)
}
  0xd2   :  { %s161_s8 = scalar_lea.hbm %s233_s2, 128 }
  0xd3   :  { %p162_p7 = scmp.ne.s32.totalorder %s233_s2, %s161_s8  ;;  %p165_p8 = scmp.lt.u32.totalorder %s161_s8, %s233_s2 }
  0xd5   :  { %p167_p9 = pnand %p165_p8, %p162_p7 }
  0xd7   :  { %170 = shalt.err (!%p167_p9)
}
  0xd8   :  { %87 = dma.vmem_to_hbm [thread:$0]  %s85_s4, 128, %s233_s2, [#allocation4]  }
  0xd9   :  { %175 = dma.done.wait [#allocation4], 128  }
  0xda   :  { %176 = vsyncadd [#allocation4], 4294967168 }
  0xdb   :  { %91 = vsyncpa [#allocation3], 1 }
  0xdc   :  { %92 = vsyncpa [#allocation6], 1 }
  0xdd   :  { %93 = vsyncpa [#allocation4], 1 }

</bundles_post_ra>
